<compile_context>
chip_gen: v7x
topology: tpu7x:2x2x1
jax: 0.10.0
libtpu: 0.0.40
codegen_flags: <defaults>
</compile_context>

<pallas_src>
import functools

import jax
import jax.numpy as jnp
from jax.experimental import pallas as pl
from jax.experimental.pallas import tpu as pltpu


# ----------------------------------------------------------------------------
# Fused kernel: the whole deconv chain for one tile of (folded) pixel rows.
# ----------------------------------------------------------------------------
def _decoder_chain_kernel(x_ref, *refs, n_layers):
    """x_ref: (TILE_M, fold*C0) bf16.  refs = (w0, b0, w1, b1, ..., out_ref).

    w_l:   (fold*4^l*C_l, fold*4^(l+1)*C_{l+1}) bf16 block-diagonal weight
    b_l:   (1, fold*4^(l+1)*C_{l+1})            f32 channel bias tiled per patch
    out:   (TILE_M, fold*4^L*C_L)               bf16 (lane-dense, 128-wide demo)
    """
    out_ref = refs[-1]
    wb = refs[:-1]

    h = x_ref[...]                                    # bf16 (TILE_M, K0)
    acc = None
    for layer in range(n_layers):
        w = wb[2 * layer][...]                        # bf16 (K_l, N_l)
        b = wb[2 * layer + 1][...]                    # f32  (1, N_l)
        acc = jnp.dot(h, w, preferred_element_type=jnp.float32) + b
        acc = jnp.maximum(acc, 0.0)                   # DeconvBlock ReLU
        if layer < n_layers - 1:
            h = acc.astype(jnp.bfloat16)              # bf16 operand for next MXU pass
    # f32 tanh on the EUP (safe on v5e: no bf16 EUP/VPU), bf16 store halves the
    # dominant HBM writeback.  (bf16 tanh would be a minor extra win on v6e/v7x.)
    out_ref[...] = jnp.tanh(acc).astype(out_ref.dtype)


# ----------------------------------------------------------------------------
# Tiling choice (review: big tiles; even >=2 "parallel" steps for v7x 2 TCs;
# never collapse to one unbounded block for awkward M)
# ----------------------------------------------------------------------------
_MAX_TILE_M = 2048  # ~0.6 MB bf16 out-tile -> far under v5e 16 MiB scoped VMEM


def _choose_tiling(m_rows):
    """Return (tile_m, num_steps); padded rows = tile_m * num_steps >= m_rows."""
    # Prefer large exact-divisor tiles with an EVEN number of >=2 grid steps
    # (keeps both v7x TensorCores busy and balanced; no-op on v5e/v6e).
    for t in (2048, 1024, 512, 256, 128):
        if m_rows % t == 0 and (m_rows // t) >= 2 and (m_rows // t) % 2 == 0:
            return t, m_rows // t
    if m_rows <= 2 * _MAX_TILE_M:
        # awkward / small M: two equal tiles, zero-padded tail.
        t = max(16, ((pl.cdiv(m_rows, 2) + 15) // 16) * 16)
        return t, 2
    # very large awkward M: cap tile, pad the last step.
    return _MAX_TILE_M, pl.cdiv(m_rows, _MAX_TILE_M)


def compute_fold(depth):
    """Pixels folded per kernel row so the output slab is 128-lane dense."""
    n_layers = len(depth) - 1
    out_width = (4 ** n_layers) * depth[-1]
    if out_width < 128 and 128 % out_width == 0:
        return 128 // out_width
    return 1


# ----------------------------------------------------------------------------
# Parameter preparation (done once, outside the forward pass)
# ----------------------------------------------------------------------------
def prepare_params(params, fold=1, compute_dtype=jnp.bfloat16):
    """params: list of (weight (Cin, Cout, 2, 2), bias (Cout,)) per DeconvBlock.

    Returns per-layer (W_eff, b_eff): block-diagonal matmul weight with column
    order (pixel-in-fold, a1, b1, ..., a_{l+1}, b_{l+1}, c) and matching tiled
    bias row.  Built once; bf16 weights, f32 biases.
    """
    eff = []
    groups = fold  # fold * 4^l sub-patch groups accumulated so far
    for w, b in params:
        cin, cout = w.shape[0], w.shape[1]
        w2d = jnp.transpose(w, (0, 2, 3, 1)).reshape(cin, 4 * cout)  # (ci,(a,b,co))
        w_blk = jnp.kron(jnp.eye(groups, dtype=w2d.dtype), w2d)      # block-diag
        b_eff = jnp.tile(b, 4 * groups)[None, :]                     # (1, groups*4*cout)
        eff.append((w_blk.astype(compute_dtype), b_eff.astype(jnp.float32)))
        groups *= 4
    return eff


# ----------------------------------------------------------------------------
# ConvDecoder forward: one pallas_call + boundary layout glue
# ----------------------------------------------------------------------------
def conv_decoder_forward(x_nchw, eff_params, fold):
    n, c0, h, w = x_nchw.shape
    n_layers = len(eff_params)
    m = n * h * w
    k0 = fold * c0
    kernel_out_w = eff_params[-1][0].shape[1]        # fold * 4^L * C_last
    out_width = kernel_out_w // fold                 # per-pixel output width
    c_last = out_width // (4 ** n_layers)

    # single boundary transpose: NCHW -> (pixels, channels), bf16 operands
    x2d = jnp.transpose(x_nchw, (0, 2, 3, 1)).reshape(m, c0).astype(jnp.bfloat16)

    # fold `fold` adjacent pixels into one kernel row (free row-major reshape)
    # so the kernel's output tile is a lane-dense (rows, 128) slab.
    m1 = pl.cdiv(m, fold) * fold
    if m1 != m:
        x2d = jnp.pad(x2d, ((0, m1 - m), (0, 0)))
    m_rows = m1 // fold
    x2d = x2d.reshape(m_rows, k0)

    tile_m, steps = _choose_tiling(m_rows)
    m_rows_pad = tile_m * steps
    if m_rows_pad != m_rows:
        x2d = jnp.pad(x2d, ((0, m_rows_pad - m_rows), (0, 0)))

    in_specs = [pl.BlockSpec((tile_m, k0), lambda i: (i, 0))]
    flat_args = [x2d]
    flops = 0
    w_bytes = 0
    for w_blk, b_eff in eff_params:
        k_l, n_l = w_blk.shape
        in_specs.append(pl.BlockSpec((k_l, n_l), lambda i: (0, 0)))  # VMEM-resident
        in_specs.append(pl.BlockSpec((1, n_l), lambda i: (0, 0)))    # VMEM-resident
        flat_args += [w_blk, b_eff]
        flops += 2 * m_rows_pad * k_l * n_l
        w_bytes += int(w_blk.size) * 2 + int(b_eff.size) * 4

    cost = pl.CostEstimate(
        flops=flops,
        transcendentals=m_rows_pad * kernel_out_w,                      # tanh
        bytes_accessed=m_rows_pad * (k0 * 2 + kernel_out_w * 2) + w_bytes,
    )

    y = pl.pallas_call(
        functools.partial(_decoder_chain_kernel, n_layers=n_layers),
        out_shape=jax.ShapeDtypeStruct((m_rows_pad, kernel_out_w), jnp.bfloat16),
        grid=(steps,),
        in_specs=in_specs,
        out_specs=pl.BlockSpec((tile_m, kernel_out_w), lambda i: (i, 0)),
        compiler_params=pltpu.CompilerParams(dimension_semantics=("parallel",)),
        cost_estimate=cost,
    )(*flat_args)

    # un-pad / un-fold (free row-major reshapes), then one bf16 pixel-shuffle:
    # (M, (a1,b1,...,aL,bL,c)) -> NCHW.  Output stays bf16 (cast if f32 needed).
    y = y[:m_rows].reshape(m1, out_width)[:m]
    y = y.reshape((n, h, w) + (2, 2) * n_layers + (c_last,))
    a_dims = tuple(3 + 2 * i for i in range(n_layers))
    b_dims = tuple(4 + 2 * i for i in range(n_layers))
    c_dim = 3 + 2 * n_layers
    perm = (0, c_dim, 1) + a_dims + (2,) + b_dims
    y = jnp.transpose(y, perm).reshape(n, c_last, h * 2 ** n_layers, w * 2 ** n_layers)
    return y


# ----------------------------------------------------------------------------
# Pure-JAX fp32 reference (mirrors the assumed PyTorch module exactly)
# ----------------------------------------------------------------------------
def _reference_forward(x, params):
    n_blocks = len(params)
    for i, (w, b) in enumerate(params):
        n, _, h, wd = x.shape
        cout = w.shape[1]
        y = jnp.einsum("nihw,ioab->nohwab", x, w) + b[None, :, None, None, None, None]
        y = jnp.transpose(y, (0, 1, 2, 4, 3, 5)).reshape(n, cout, 2 * h, 2 * wd)
        y = jnp.maximum(y, 0.0)
        if i == n_blocks - 1:
            y = jnp.tanh(y)
        x = y
    return x


def init_params(depth, key):
    """Deterministic init mimicking PyTorch's default uniform(-k, k)."""
    params = []
    for in_f, out_f in zip(depth, depth[1:]):
        key, kw, kb = jax.random.split(key, 3)
        bound = 1.0 / jnp.sqrt(in_f * 2 * 2)
        w = jax.random.uniform(kw, (in_f, out_f, 2, 2), jnp.float32, -bound, bound)
        b = jax.random.uniform(kb, (out_f,), jnp.float32, -bound, bound)
        params.append((w, b))
    return params


if __name__ == "__main__":
    depth = [16, 8, 4]          # reversed encoder depth list
    l_dim = 32                  # unused by the decoder forward pass

    key = jax.random.PRNGKey(0)
    key, kx = jax.random.split(key)
    params = init_params(depth, key)

    # NCHW latent input: batch=2, channels=16, spatial 16x16 -> 512 pixels.
    # fold=2 packs two 64-wide output pixel rows into one 128-lane kernel row,
    # so M_rows=256, TILE_M=128, grid=2 even "parallel" steps.
    x = jax.random.normal(kx, (2, depth[0], 16, 16), jnp.float32)

    fold = compute_fold(depth)
    eff_params = prepare_params(params, fold=fold)         # built once, bf16 weights
    forward = jax.jit(functools.partial(conv_decoder_forward, fold=fold))

    out = forward(x, eff_params)
    out = jax.block_until_ready(out)

    ref = _reference_forward(x, params)                    # fp32 reference
    assert out.shape == (2, depth[-1], 64, 64), out.shape
    assert out.dtype == jnp.bfloat16, out.dtype
    # bf16 operands / fp32 accumulation / bf16 output vs fp32 reference.
    err = float(jnp.max(jnp.abs(out.astype(jnp.float32) - ref)))
    assert err < 3e-2, f"mismatch vs reference: max abs err {err}"

    print("KERNEL_OK")
</pallas_src>

<mosaic_0001>
module attributes {stable_mosaic.version = 11 : i64} {
  func.func @_decoder_chain_kernel(%arg0: i32, %arg1: memref<128x32xbf16, #tpu.memory_space<vmem>>, %arg2: memref<32x64xbf16, #tpu.memory_space<vmem>>, %arg3: memref<1x64xf32, #tpu.memory_space<vmem>>, %arg4: memref<64x128xbf16, #tpu.memory_space<vmem>>, %arg5: memref<1x128xf32, #tpu.memory_space<vmem>>, %arg6: memref<128x128xbf16, #tpu.memory_space<vmem>>) attributes {dimension_semantics = [#tpu.dimension_semantics<parallel>], iteration_bounds = array<i64: 2>, scalar_prefetch = 0 : i64, scratch_operands = 0 : i64, tpu.core_type = #tpu.core_type<tc>, window_params = [{transform_indices = @transform_0, window_bounds = array<i64: 128, 32>}, {pipeline_mode = #tpu.pipeline_mode<synchronous>, transform_indices = @transform_1, window_bounds = array<i64: 32, 64>}, {pipeline_mode = #tpu.pipeline_mode<synchronous>, transform_indices = @transform_2, window_bounds = array<i64: 1, 64>}, {pipeline_mode = #tpu.pipeline_mode<synchronous>, transform_indices = @transform_3, window_bounds = array<i64: 64, 128>}, {pipeline_mode = #tpu.pipeline_mode<synchronous>, transform_indices = @transform_4, window_bounds = array<i64: 1, 128>}, {transform_indices = @transform_5, window_bounds = array<i64: 128, 128>}]} {
    %c0 = arith.constant 0 : index
    %c0_0 = arith.constant 0 : index
    %0 = vector.load %arg1[%c0, %c0_0] : memref<128x32xbf16, #tpu.memory_space<vmem>>, vector<128x32xbf16>
    %c0_1 = arith.constant 0 : index
    %c0_2 = arith.constant 0 : index
    %1 = vector.load %arg2[%c0_1, %c0_2] : memref<32x64xbf16, #tpu.memory_space<vmem>>, vector<32x64xbf16>
    %c0_3 = arith.constant 0 : index
    %c0_4 = arith.constant 0 : index
    %2 = vector.load %arg3[%c0_3, %c0_4] : memref<1x64xf32, #tpu.memory_space<vmem>>, vector<1x64xf32>
    %cst = arith.constant dense<0.000000e+00> : vector<128x64xf32>
    %3 = tpu.matmul %0, %1, %cst {dimension_numbers = #tpu.dot_dimension_numbers<[1], [0], [0], [1], [0, 0, 1, 1], [], []>} : vector<128x32xbf16>, vector<32x64xbf16>, vector<128x64xf32> -> vector<128x64xf32>
    %4 = vector.broadcast %2 : vector<1x64xf32> to vector<128x64xf32>
    %5 = arith.addf %3, %4 : vector<128x64xf32>
    %cst_5 = arith.constant 0.000000e+00 : f32
    %6 = vector.broadcast %cst_5 : f32 to vector<128x64xf32>
    %7 = arith.maximumf %5, %6 : vector<128x64xf32>
    %8 = arith.truncf %7 : vector<128x64xf32> to vector<128x64xbf16>
    %c0_6 = arith.constant 0 : index
    %c0_7 = arith.constant 0 : index
    %9 = vector.load %arg4[%c0_6, %c0_7] : memref<64x128xbf16, #tpu.memory_space<vmem>>, vector<64x128xbf16>
    %c0_8 = arith.constant 0 : index
    %c0_9 = arith.constant 0 : index
    %10 = vector.load %arg5[%c0_8, %c0_9] : memref<1x128xf32, #tpu.memory_space<vmem>>, vector<1x128xf32>
    %cst_10 = arith.constant dense<0.000000e+00> : vector<128x128xf32>
    %11 = tpu.matmul %8, %9, %cst_10 {dimension_numbers = #tpu.dot_dimension_numbers<[1], [0], [0], [1], [0, 0, 1, 1], [], []>} : vector<128x64xbf16>, vector<64x128xbf16>, vector<128x128xf32> -> vector<128x128xf32>
    %12 = vector.broadcast %10 : vector<1x128xf32> to vector<128x128xf32>
    %13 = arith.addf %11, %12 : vector<128x128xf32>
    %cst_11 = arith.constant 0.000000e+00 : f32
    %14 = vector.broadcast %cst_11 : f32 to vector<128x128xf32>
    %15 = arith.maximumf %13, %14 : vector<128x128xf32>
    %16 = math.tanh %15 : vector<128x128xf32>
    %17 = arith.truncf %16 : vector<128x128xf32> to vector<128x128xbf16>
    %c0_12 = arith.constant 0 : index
    %c0_13 = arith.constant 0 : index
    %18 = vector.load %arg6[%c0_12, %c0_13] : memref<128x128xbf16, #tpu.memory_space<vmem>>, vector<128x128xbf16>
    tpu.vector_store %arg6[%c0_12, %c0_13], %17 {strides = array<i32>} : memref<128x128xbf16, #tpu.memory_space<vmem>>, vector<128x128xbf16>,
    return
  }
  func.func @transform_0(%arg0: i32) -> (i32, i32) {
    %c0_i32 = arith.constant 0 : i32
    %c0_i32_0 = arith.constant 0 : i32
    return %arg0, %c0_i32 : i32, i32
  }
  func.func @transform_1(%arg0: i32) -> (i32, i32) {
    %c0_i32 = arith.constant 0 : i32
    %c0_i32_0 = arith.constant 0 : i32
    %c0_i32_1 = arith.constant 0 : i32
    return %c0_i32, %c0_i32_0 : i32, i32
  }
  func.func @transform_2(%arg0: i32) -> (i32, i32) {
    %c0_i32 = arith.constant 0 : i32
    %c0_i32_0 = arith.constant 0 : i32
    %c0_i32_1 = arith.constant 0 : i32
    return %c0_i32, %c0_i32_0 : i32, i32
  }
  func.func @transform_3(%arg0: i32) -> (i32, i32) {
    %c0_i32 = arith.constant 0 : i32
    %c0_i32_0 = arith.constant 0 : i32
    %c0_i32_1 = arith.constant 0 : i32
    return %c0_i32, %c0_i32_0 : i32, i32
  }
  func.func @transform_4(%arg0: i32) -> (i32, i32) {
    %c0_i32 = arith.constant 0 : i32
    %c0_i32_0 = arith.constant 0 : i32
    %c0_i32_1 = arith.constant 0 : i32
    return %c0_i32, %c0_i32_0 : i32, i32
  }
  func.func @transform_5(%arg0: i32) -> (i32, i32) {
    %c0_i32 = arith.constant 0 : i32
    %c0_i32_0 = arith.constant 0 : i32
    return %arg0, %c0_i32 : i32, i32
  }
}

</mosaic_0001>

<bundles_post_ra>
// kernel: conv_decoder_forward.1
= control target key start
LH: loop header
LB: loop body
LE: loop exit
PB: predicated region body
PF: predicated region fallthrough
CT: control target
= control target key end

     0   :  { %10 = vsyncpa [#allocation3], 0  ;;  %s1545_s0 = inlined_call_operand.vmem [shape: bf16[256,32], index: 0, kind: input, shape index: {}]   ;;  %s1546_s1 = inlined_call_operand.hbm [shape: bf16[32,64], index: 1, kind: input, shape index: {}]   ;;  %s1547_s2 = inlined_call_operand.hbm [shape: f32[1,64], index: 2, kind: input, shape index: {}]   ;;  %s1548_s3 = inlined_call_operand.hbm [shape: bf16[64,128], index: 3, kind: input, shape index: {}]   ;;  %s1549_s4 = inlined_call_operand.hbm [shape: f32[1,128], index: 4, kind: input, shape index: {}]   ;;  %s1550_s5 = inlined_call_operand.vmem [shape: bf16[256,128], index: 5, kind: output, shape index: {}]  }
   0x1   :  { %11 = vsyncpa [#allocation5], 0 }
   0x2   :  { %12 = vsyncpa [#allocation8], 0  ;;  %s1340_s18 = smov 0  }
   0x3 LB: > { %s1304_s19 = smov [#allocation4]   ;;  %s879_s21 = sadd.s32 4294967295, %s1302_s18   ;;  %s1302_s18 = sphi %s1340_s18, %s18_s18  }
   0x4   : > { %s185_s20 = sshll.u32 %s1304_s19, 4  ;;  %p881_p0 = scmp.ge.s32.totalorder %s1302_s18, 1  ;;  %s1354_s20 = int_to_ptr.vmem [resolvable:$true] %s185_s20 }
   0x5   : > { %p159_p1 = scmp.lt.s32.totalorder %s1302_s18, 3  ;;  %p1350_p2 = scmp.eq.s32.totalorder %s879_s21, 0 }
   0x6   : > { %s1305_s24 = smov [#allocation2]   ;;  %s1306_s27 = smov [#allocation6]  }
   0x7   : > { %s1554_s22 = scalar_select %p1350_p2, 1, 0 }
   0x8   : > { %p1356_p3 = pnand %p881_p0, %p159_p1  ;;  %s171_s25 = sshll.u32 %s1305_s24, 4  ;;  %s1362_s25 = int_to_ptr.vmem [resolvable:$true] %s171_s25 }
   0x9   : > { %s195_s28 = sshll.u32 %s1306_s27, 4  ;;  %s1307_s29 = smov [#allocation7]   ;;  %s1370_s28 = int_to_ptr.vmem [resolvable:$true] %s195_s28 }
   0xa   : > { %s1555_s23 = scalar_select %p1356_p3, 1, 0 }
   0xb   : > { %p1091_p4 = pneg %p1356_p3  ;;  %s1372_s30 = sshll.u32 %s1307_s29, 4  ;;  %s210_s30 = int_to_ptr.vmem [resolvable:$true] %s1372_s30 }
   0xc   : > { %s1172_s8 = scalar_lea.hbm %s1547_s2, 16 }
   0xd   : > { %p1366_p5 = pnand %p1350_p2, %p1091_p4  ;;  %p1173_p6 = scmp.ne.s32.totalorder %s1547_s2, %s1172_s8 }
   0xe   : > { %p1179_p10 = scmp.lt.u32.totalorder %s1172_s8, %s1547_s2 }
   0xf   : > { %p1382_p7 = pneg %p1366_p5 }
  0x11   : > { %p1175_p8 = pnand %p1382_p7, %p1173_p6 }
  0x13   : > { %p1176_p9 = pneg %p1175_p8 }
  0x15   : > { %p1181_p11 = pnand %p1179_p10, %p1176_p9 }
  0x17   : > { %1184 = shalt.err (!%p1181_p11)
}
  0x18   : > { %s1185_s14 = scalar_lea.vmem %s1354_s20, 16  ;;  %s1192_s15 = scalar_lea.vmem %s1354_s20, 32 }
  0x19   : > { %p1186_p12 = scmp.ne.s32.totalorder %s1354_s20, %s1185_s14  ;;  %p1193_p1 = scmp.lt.s32.totalorder %s1354_s20, %s1354_s20 }
  0x1a   : > { %p1194_p4 = scmp.lt.s32.totalorder %s1192_s15, %s1185_s14 }
  0x1b   : > { %p1188_p13 = pnand %p1186_p12, %p1382_p7 }
  0x1c   : > { %p1195_p6 = por %p1194_p4, %p1193_p1 }
  0x1d   : > { %p1189_p0 = pneg %p1188_p13 }
  0x1f   : > { %p1196_p8 = pnand %p1195_p6, %p1189_p0 }
  0x21   : > { %1199 = shalt.err (!%p1196_p8)
}
  0x22   : > { %1097 = dma.hbm_to_vmem [thread:$0]  (!%p1366_p5), %s1547_s2, 16, %s1354_s20, [#allocation5]  }
  0x23   : > { %s1200_s27 = scalar_lea.hbm %s1546_s1, 256 }
  0x24   : > { %p1201_p9 = scmp.ne.s32.totalorder %s1546_s1, %s1200_s27  ;;  %p1207_p12 = scmp.lt.u32.totalorder %s1200_s27, %s1546_s1 }
  0x26   : > { %p1203_p10 = pnand %p1201_p9, %p1382_p7 }
  0x28   : > { %p1204_p11 = pneg %p1203_p10 }
  0x2a   : > { %p1209_p13 = pnand %p1207_p12, %p1204_p11 }
  0x2c   : > { %1212 = shalt.err (!%p1209_p13)
}
  0x2d   : > { %s1213_s20 = scalar_lea.vmem %s1362_s25, 256  ;;  %p1221_p6 = scmp.lt.s32.totalorder %s1362_s25, %s1362_s25 }
  0x2e   : > { %p1214_p0 = scmp.ne.s32.totalorder %s1362_s25, %s1213_s20  ;;  %p1222_p8 = scmp.lt.s32.totalorder %s1213_s20, %s1213_s20 }
  0x30   : > { %p1216_p1 = pnand %p1214_p0, %p1382_p7  ;;  %p1223_p9 = por %p1222_p8, %p1221_p6 }
  0x32   : > { %p1217_p4 = pneg %p1216_p1 }
  0x34   : > { %p1224_p10 = pnand %p1223_p9, %p1217_p4 }
  0x36   : > { %1227 = shalt.err (!%p1224_p10)
}
  0x37   : > { %s1308_s9 = smov 64   ;;  %s1309_s10 = smov 4  }
  0x38   : > { %1094 = dma.hbm_to_vmem [thread:$0]  (!%p1366_p5), %s1546_s1, 256, %s1362_s25, [#allocation3], %s1308_s9, %s1308_s9, %s1309_s10  }
  0x39   : > { %s1228_s16 = scalar_lea.hbm %s1548_s3, 512 }
  0x3a   : > { %p1229_p11 = scmp.ne.s32.totalorder %s1548_s3, %s1228_s16  ;;  %p1235_p0 = scmp.lt.u32.totalorder %s1228_s16, %s1548_s3 }
  0x3c   : > { %p1231_p12 = pnand %p1229_p11, %p1382_p7 }
  0x3e   : > { %p1232_p13 = pneg %p1231_p12 }
  0x40   : > { %p1237_p1 = pnand %p1235_p0, %p1232_p13 }
  0x42   : > { %1240 = shalt.err (!%p1237_p1)
}
  0x43   : > { %s1241_s25 = scalar_lea.vmem %s1370_s28, 512  ;;  %p1249_p9 = scmp.lt.s32.totalorder %s1370_s28, %s1370_s28 }
  0x44   : > { %p1242_p4 = scmp.ne.s32.totalorder %s1370_s28, %s1241_s25  ;;  %p1250_p10 = scmp.lt.s32.totalorder %s1241_s25, %s1241_s25 }
  0x46   : > { %p1244_p6 = pnand %p1242_p4, %p1382_p7  ;;  %p1251_p11 = por %p1250_p10, %p1249_p9 }
  0x48   : > { %p1245_p8 = pneg %p1244_p6 }
  0x4a   : > { %p1252_p12 = pnand %p1251_p11, %p1245_p8 }
  0x4c   : > { %1255 = shalt.err (!%p1252_p12)
}
  0x4d   : > { %1100 = dma.hbm_to_vmem [thread:$0]  (!%p1366_p5), %s1548_s3, 512, %s1370_s28, [#allocation5], %s1308_s9, %s1308_s9, %s1309_s10  }
  0x4e   : > { %s1256_s20 = scalar_lea.hbm %s1549_s4, 16 }
  0x4f   : > { %p1257_p13 = scmp.ne.s32.totalorder %s1549_s4, %s1256_s20  ;;  %p1263_p4 = scmp.lt.u32.totalorder %s1256_s20, %s1549_s4 }
  0x51   : > { %p1259_p0 = pnand %p1257_p13, %p1382_p7 }
  0x53   : > { %p1260_p1 = pneg %p1259_p0 }
  0x55   : > { %p1265_p6 = pnand %p1263_p4, %p1260_p1 }
  0x57   : > { %1268 = shalt.err (!%p1265_p6)
}
  0x58   : > { %s1269_s16 = scalar_lea.vmem %s210_s30, 16  ;;  %s1276_s28 = scalar_lea.vmem %s210_s30, 32 }
  0x59   : > { %p1270_p8 = scmp.ne.s32.totalorder %s210_s30, %s1269_s16  ;;  %p1277_p11 = scmp.lt.s32.totalorder %s210_s30, %s210_s30 }
  0x5a   : > { %p1278_p12 = scmp.lt.s32.totalorder %s1276_s28, %s1269_s16 }
  0x5b   : > { %p1272_p9 = pnand %p1270_p8, %p1382_p7 }
  0x5c   : > { %p1279_p2 = por %p1278_p12, %p1277_p11 }
  0x5d   : > { %p1273_p10 = pneg %p1272_p9 }
  0x5f   : > { %p1280_p3 = pnand %p1279_p2, %p1273_p10 }
  0x61   : > { %1283 = shalt.err (!%p1280_p3)
}
  0x62   : > { %1103 = dma.hbm_to_vmem [thread:$0]  (!%p1366_p5), %s1549_s4, 16, %s210_s30, [#allocation8]  }
  0x63   : > { %p1558_p13 = scmp.ne.s32.totalorder %s1555_s23, 0 }
  0x64   : > { %p1559_p0 = scmp.ne.s32.totalorder (!%p1558_p13), %s1554_s22, 0 }
  0x65   : > { %231 = sbr.rel (%p1558_p13) target bundleno = 601 (0x259), region = 40 }
  0x6c   : > { %1289 = dma.done.wait (%p1559_p0), [#allocation3], 256  }
  0x6d   : > { %1291 = vsyncadd (%p1559_p0), [#allocation3], 4294967040 }
  0x6e   : > { %1293 = dma.done.wait (%p1559_p0), [#allocation5], 528  }
  0x6f   : > { %1295 = vsyncadd (%p1559_p0), [#allocation5], 4294966768 }
  0x70   : > { %1297 = dma.done.wait (%p1559_p0), [#allocation8], 16  }
  0x71   : > { %1299 = vsyncadd (%p1559_p0), [#allocation8], 4294967280  ;;  %s892_s23 = sshll.u32 %s879_s21, 4  ;;  %v1126_v0 = vld [vmem:[#allocation2] sm:$0xff]   ;;  %v1127_v1 = vld [vmem:[#allocation2 + $0x8] sm:$0xff]   ;;  %vm363_vm0 = vcmask 261120  }
  0x72   : > { %p272_p2 = scmp.lt.s32.totalorder %s892_s23, 31  ;;  %1031 = vmatprep.subr.bf16.mxu0 %v1126_v0  ;;  %v1136_v5 = vld [vmem:[#allocation6] sm:$0xff]   ;;  %v1137_v6 = vld [vmem:[#allocation6 + $0x8] sm:$0xff]   ;;  %v1138_v12 = vld [vmem:[#allocation6 + $0x10] sm:$0xff]   ;;  %vm548_vm1 = vcmask 523264  }
  0x73   : > { %1032 = vmatpush3.bf16.msra.mxu0 %v1126_v0  ;;  %1051 = vmatprep.subr.bf16.mxu1 %v1136_v5  ;;  %v1139_v13 = vld [vmem:[#allocation6 + $0x18] sm:$0xff]  }
  0x74   : > { %s1561_s23 = smov (!%p272_p2, %s892_s23), 31  ;;  %1033 = vmatprep.subr.bf16.mxu0 %v1127_v1  ;;  %1052 = vmatpush3.bf16.msra.mxu1 %v1136_v5  ;;  %v896_v14 = vld [vmem:[#allocation4] ss:$0 sm:$0xff] }
  0x75   : > { %s893_s26 = sshll.u32 %s1561_s23, 2  ;;  %1053 = vmatprep.subr.bf16.mxu1 %v1137_v6 }
  0x76   : > { %s275_s17 = scalar_lea.vmem %s1545_s0, %s893_s26  ;;  %s1524_s19 = scalar_lea.vmem %s1550_s5, %s893_s26 }
  0x77   : > { %v1128_v2 = vld [vmem:[%s275_s17] sm:$0xff]   ;;  %v1129_v3 = vld [vmem:[%s275_s17 + $0x8] sm:$0xff]   ;;  %1034 = vmatpush3.bf16.msra.mxu0 %v1127_v1  ;;  %v1130_v4 = vld [vmem:[%s275_s17 + $0x10] sm:$0xff]  }
  0x78   : > { %1035 = vmatprep.mubr.msk.bf16.mxu0 %vm363_vm0, %v1128_v2  ;;  %v1131_v7 = vld [vmem:[%s275_s17 + $0x18] sm:$0xff]   ;;  %v1132_v8 = vld [vmem:[%s275_s17 + $0x20] sm:$0xff]   ;;  %1054 = vmatpush3.bf16.msra.mxu1 %v1137_v6  ;;  %v1133_v9 = vld [vmem:[%s275_s17 + $0x28] sm:$0xff]  }
  0x79   : > { %v1134_v10 = vld [vmem:[%s275_s17 + $0x30] sm:$0xff]   ;;  %v1135_v11 = vld [vmem:[%s275_s17 + $0x38] sm:$0xff]   ;;  %1055 = vmatprep.subr.bf16.mxu1 %v1138_v12 }
  0x7a   : > { %1036 = vmatmul.mubr.msk.bf16.vlgmr.msra.gmra.mrb[0].mxu0 %vm363_vm0, %v1129_v3 }
  0x7b   : > { %1039 = vmatprep.mubr.msk.bf16.mxu0 %vm363_vm0, %v1130_v4 }
  0x7c   : > { %1056 = vmatpush3.bf16.msra.mxu1 %v1138_v12 }
  0x7d   : > { %1057 = vmatprep.subr.bf16.mxu1 %v1139_v13 }
  0x80   : > { %1058 = vmatpush3.bf16.msra.mxu1 %v1139_v13 }
  0x82   : > { %1040 = vmatmul.mubr.msk.bf16.gmra.mrb[4].mxu0 %vm363_vm0, %v1131_v7  ;;  %v1509_v7 = vld [vmem:[#allocation7] ss:$0 sm:$0xff] }
  0x83   : > { %1043 = vmatprep.mubr.msk.bf16.mxu0 %vm363_vm0, %v1132_v8 }
  0x8a   : > { %1044 = vmatmul.mubr.msk.bf16.gmra.mrb[8].mxu0 %vm363_vm0, %v1133_v9 }
  0x8b   : > { %1047 = vmatprep.mubr.msk.bf16.mxu0 %vm363_vm0, %v1134_v10 }
  0x92   : > { %1048 = vmatmul.mubr.msk.bf16.gmra.mrb[12].mxu0 %vm363_vm0, %v1135_v11 }
 0x14d   : > { %v1037_v15 = vpop.f32.mrb[0].mxu0 }
 0x14e   : > { %v431_v16 = vadd.f32 %v1037_v15, %v896_v14  ;;  %v422_v17 = vpop.f32.mrb[1].mxu0 }
 0x14f   : > { %v423_v18 = vadd.f32 %v896_v14, %v422_v17  ;;  %v1038_v19 = vpop.f32.mrb[2].mxu0 }
 0x150   : > { %v434_v20 = vadd.f32 %v1038_v19, %v896_v14  ;;  %v425_v21 = vpop.f32.mrb[3].mxu0  ;;  %v487_v23 = vmax.f32 %v431_v16, 0.0 }
 0x151   : > { %v426_v22 = vadd.f32 %v896_v14, %v425_v21  ;;  %v485_v25 = vmax.f32 %v423_v18, 0.0 }
 0x152   : > { %v488_v24 = vmax.f32 %v434_v20, 0.0 }
 0x153   : > { %v486_v26 = vmax.f32 %v426_v22, 0.0 }
 0x154   : > { %v502_v27 = vpack.c.bf16 %v488_v24, %v487_v23 }
 0x155   : > { %v1041_v28 = vpop.f32.mrb[4].mxu0  ;;  %v501_v29 = vpack.c.bf16 %v486_v26, %v485_v25 }
 0x156   : > { %v447_v30 = vadd.f32 %v1041_v28, %v896_v14  ;;  %v438_v31 = vpop.f32.mrb[5].mxu0 }
 0x157   : > { %v439_v32 = vadd.f32 %v896_v14, %v438_v31  ;;  %v1042_v33 = vpop.f32.mrb[6].mxu0  ;;  %1059 = vmatprep.mubr.msk.bf16.mxu1 %vm548_vm1, %v501_v29 }
 0x158   : > { %v450_v34 = vadd.f32 %v1042_v33, %v896_v14  ;;  %v441_v35 = vpop.f32.mrb[7].mxu0  ;;  %1060 = vmatmul.mubr.msk.bf16.vlgmr.msra.gmra.mrb[0].mxu1 %vm548_vm1, %v502_v27  ;;  %v491_v37 = vmax.f32 %v447_v30, 0.0 }
 0x159   : > { %v442_v36 = vadd.f32 %v896_v14, %v441_v35  ;;  %v489_v39 = vmax.f32 %v439_v32, 0.0 }
 0x15a   : > { %v492_v38 = vmax.f32 %v450_v34, 0.0 }
 0x15b   : > { %v490_v40 = vmax.f32 %v442_v36, 0.0 }
 0x15c   : > { %v504_v41 = vpack.c.bf16 %v492_v38, %v491_v37 }
 0x15d   : > { %v503_v42 = vpack.c.bf16 %v490_v40, %v489_v39  ;;  %v1045_v43 = vpop.f32.mrb[8].mxu0 }
 0x15e   : > { %v463_v44 = vadd.f32 %v1045_v43, %v896_v14  ;;  %v454_v45 = vpop.f32.mrb[9].mxu0 }
 0x15f   : > { %v455_v46 = vadd.f32 %v896_v14, %v454_v45  ;;  %v1046_v47 = vpop.f32.mrb[10].mxu0  ;;  %1063 = vmatprep.mubr.msk.bf16.mxu1 %vm548_vm1, %v503_v42 }
 0x160   : > { %v466_v48 = vadd.f32 %v1046_v47, %v896_v14  ;;  %v457_v49 = vpop.f32.mrb[11].mxu0  ;;  %1064 = vmatmul.mubr.msk.bf16.gmra.mrb[4].mxu1 %vm548_vm1, %v504_v41  ;;  %v495_v51 = vmax.f32 %v463_v44, 0.0 }
 0x161   : > { %v458_v50 = vadd.f32 %v896_v14, %v457_v49  ;;  %v493_v53 = vmax.f32 %v455_v46, 0.0 }
 0x162   : > { %v496_v52 = vmax.f32 %v466_v48, 0.0 }
 0x163   : > { %v494_v54 = vmax.f32 %v458_v50, 0.0 }
 0x164   : > { %v506_v55 = vpack.c.bf16 %v496_v52, %v495_v51 }
 0x165   : > { %v505_v56 = vpack.c.bf16 %v494_v54, %v493_v53  ;;  %v1049_v57 = vpop.f32.mrb[12].mxu0 }
 0x166   : > { %v479_v58 = vadd.f32 %v1049_v57, %v896_v14  ;;  %v470_v59 = vpop.f32.mrb[13].mxu0 }
 0x167   : > { %v471_v60 = vadd.f32 %v896_v14, %v470_v59  ;;  %v1050_v61 = vpop.f32.mrb[14].mxu0  ;;  %1067 = vmatprep.mubr.msk.bf16.mxu1 %vm548_vm1, %v505_v56 }
 0x168   : > { %v482_v62 = vadd.f32 %v1050_v61, %v896_v14  ;;  %v473_v63 = vpop.f32.mrb[15].mxu0  ;;  %1068 = vmatmul.mubr.msk.bf16.gmra.mrb[8].mxu1 %vm548_vm1, %v506_v55  ;;  %v499_v1 = vmax.f32 %v479_v58, 0.0 }
 0x169   : > { %v474_v0 = vadd.f32 %v896_v14, %v473_v63  ;;  %v497_v3 = vmax.f32 %v471_v60, 0.0 }
 0x16a   : > { %v500_v2 = vmax.f32 %v482_v62, 0.0 }
 0x16b   : > { %v498_v4 = vmax.f32 %v474_v0, 0.0 }
 0x16c   : > { %v508_v5 = vpack.c.bf16 %v500_v2, %v499_v1 }
 0x16d   : > { %v507_v6 = vpack.c.bf16 %v498_v4, %v497_v3 }
 0x16f   : > { %1071 = vmatprep.mubr.msk.bf16.mxu1 %vm548_vm1, %v507_v6 }
 0x170   : > { %1072 = vmatmul.mubr.msk.bf16.gmra.mrb[12].mxu1 %vm548_vm1, %v508_v5 }
 0x22b   : > { %v1061_v8 = vpop.f32.mrb[0].mxu1 }
 0x22c   : > { %v616_v9 = vadd.f32 %v1061_v8, %v1509_v7  ;;  %v607_v10 = vpop.f32.mrb[1].mxu1 }
 0x22d   : > { %v608_v11 = vadd.f32 %v1509_v7, %v607_v10  ;;  %v1062_v12 = vpop.f32.mrb[2].mxu1 }
 0x22e   : > { %v672_v13 = vmax.f32 %v616_v9, 0.0  ;;  %v619_v14 = vadd.f32 %v1062_v12, %v1509_v7  ;;  %v610_v15 = vpop.f32.mrb[3].mxu1 }
 0x22f   : > { %v670_v16 = vmax.f32 %v608_v11, 0.0  ;;  %v611_v17 = vadd.f32 %v1509_v7, %v610_v15 }
 0x230   : > { %1140 = vtanh.f32 %v672_v13  ;;  %v673_v18 = vmax.f32 %v619_v14, 0.0 }
 0x231   : > { %1142 = vtanh.f32 %v670_v16  ;;  %v671_v19 = vmax.f32 %v611_v17, 0.0 }
 0x232   : > { %1144 = vtanh.f32 %v673_v18 }
 0x233   : > { %1146 = vtanh.f32 %v671_v19  ;;  %v1065_v20 = vpop.f32.mrb[4].mxu1 }
 0x234   : > { %v632_v21 = vadd.f32 %v1065_v20, %v1509_v7  ;;  %v623_v22 = vpop.f32.mrb[5].mxu1 }
 0x235   : > { %v624_v23 = vadd.f32 %v1509_v7, %v623_v22  ;;  %v1066_v24 = vpop.f32.mrb[6].mxu1 }
 0x236   : > { %v676_v25 = vmax.f32 %v632_v21, 0.0  ;;  %v635_v26 = vadd.f32 %v1066_v24, %v1509_v7  ;;  %v626_v27 = vpop.f32.mrb[7].mxu1 }
 0x237   : > { %v674_v28 = vmax.f32 %v624_v23, 0.0  ;;  %v627_v29 = vadd.f32 %v1509_v7, %v626_v27 }
 0x238   : > { %1148 = vtanh.f32 %v676_v25  ;;  %v677_v30 = vmax.f32 %v635_v26, 0.0 }
 0x239   : > { %1150 = vtanh.f32 %v674_v28  ;;  %v675_v31 = vmax.f32 %v627_v29, 0.0 }
 0x23a   : > { %v1141_v32 = vpop.eup %1140  ;;  %1152 = vtanh.f32 %v677_v30 }
 0x23b   : > { %v1143_v33 = vpop.eup %1142  ;;  %1154 = vtanh.f32 %v675_v31  ;;  %v1069_v34 = vpop.f32.mrb[8].mxu1 }
 0x23c   : > { %v1145_v35 = vpop.eup %1144  ;;  %v648_v36 = vadd.f32 %v1069_v34, %v1509_v7  ;;  %v639_v37 = vpop.f32.mrb[9].mxu1 }
 0x23d   : > { %v1147_v38 = vpop.eup %1146  ;;  %v970_v39 = vpack.c.bf16 %v1145_v35, %v1141_v32  ;;  %v640_v40 = vadd.f32 %v1509_v7, %v639_v37  ;;  %v1070_v41 = vpop.f32.mrb[10].mxu1 }
 0x23e   : > { %v965_v42 = vpack.c.bf16 %v1147_v38, %v1143_v33  ;;  %v680_v43 = vmax.f32 %v648_v36, 0.0  ;;  %v651_v44 = vadd.f32 %v1070_v41, %v1509_v7  ;;  %v642_v45 = vpop.f32.mrb[11].mxu1 }
 0x23f   : > { %1002 = vst [vmem:[%s1524_s19 + $0x8] sm:$0xff] %v970_v39   ;;  %v678_v46 = vmax.f32 %v640_v40, 0.0  ;;  %v643_v47 = vadd.f32 %v1509_v7, %v642_v45 }
 0x240   : > { %966 = vst [vmem:[%s1524_s19] sm:$0xff] %v965_v42   ;;  %1156 = vtanh.f32 %v680_v43  ;;  %v681_v48 = vmax.f32 %v651_v44, 0.0 }
 0x241   : > { %1158 = vtanh.f32 %v678_v46  ;;  %v679_v49 = vmax.f32 %v643_v47, 0.0 }
 0x242   : > { %v1149_v50 = vpop.eup %1148  ;;  %1160 = vtanh.f32 %v681_v48 }
 0x243   : > { %v1151_v51 = vpop.eup %1150  ;;  %1162 = vtanh.f32 %v679_v49  ;;  %v1073_v52 = vpop.f32.mrb[12].mxu1 }
 0x244   : > { %v1153_v53 = vpop.eup %1152  ;;  %v664_v54 = vadd.f32 %v1073_v52, %v1509_v7  ;;  %v655_v55 = vpop.f32.mrb[13].mxu1 }
 0x245   : > { %v1155_v56 = vpop.eup %1154  ;;  %v980_v57 = vpack.c.bf16 %v1153_v53, %v1149_v50  ;;  %v656_v58 = vadd.f32 %v1509_v7, %v655_v55  ;;  %v1074_v59 = vpop.f32.mrb[14].mxu1 }
 0x246   : > { %v975_v60 = vpack.c.bf16 %v1155_v56, %v1151_v51  ;;  %v684_v61 = vmax.f32 %v664_v54, 0.0  ;;  %v667_v62 = vadd.f32 %v1074_v59, %v1509_v7  ;;  %v658_v63 = vpop.f32.mrb[15].mxu1 }
 0x247   : > { %1004 = vst [vmem:[%s1524_s19 + $0x18] sm:$0xff] %v980_v57   ;;  %v682_v0 = vmax.f32 %v656_v58, 0.0  ;;  %v659_v1 = vadd.f32 %v1509_v7, %v658_v63 }
 0x248   : > { %1003 = vst [vmem:[%s1524_s19 + $0x10] sm:$0xff] %v975_v60   ;;  %1164 = vtanh.f32 %v684_v61  ;;  %v685_v2 = vmax.f32 %v667_v62, 0.0 }
 0x249   : > { %1166 = vtanh.f32 %v682_v0  ;;  %v683_v3 = vmax.f32 %v659_v1, 0.0 }
 0x24a   : > { %v1157_v4 = vpop.eup %1156  ;;  %1168 = vtanh.f32 %v685_v2 }
 0x24b   : > { %v1159_v5 = vpop.eup %1158  ;;  %1170 = vtanh.f32 %v683_v3 }
 0x24c   : > { %v1161_v6 = vpop.eup %1160 }
 0x24d   : > { %v1163_v8 = vpop.eup %1162  ;;  %v990_v9 = vpack.c.bf16 %v1161_v6, %v1157_v4 }
 0x24e   : > { %v985_v10 = vpack.c.bf16 %v1163_v8, %v1159_v5 }
 0x24f   : > { %1006 = vst [vmem:[%s1524_s19 + $0x28] sm:$0xff] %v990_v9  }
 0x250   : > { %1005 = vst [vmem:[%s1524_s19 + $0x20] sm:$0xff] %v985_v10  }
 0x252   : > { %v1165_v11 = vpop.eup %1164 }
 0x253   : > { %v1167_v12 = vpop.eup %1166 }
 0x254   : > { %v1169_v7 = vpop.eup %1168 }
 0x255   : > { %v1171_v13 = vpop.eup %1170  ;;  %v1000_v14 = vpack.c.bf16 %v1169_v7, %v1165_v11 }
 0x256   : > { %v995_v15 = vpack.c.bf16 %v1171_v13, %v1167_v12 }
 0x257   : > { %1008 = vst [vmem:[%s1524_s19 + $0x38] sm:$0xff] %v1000_v14  }
 0x258   : > { %1007 = vst [vmem:[%s1524_s19 + $0x30] sm:$0xff] %v995_v15  }
 0x259 PF: > { %s18_s18 = sadd.s32 1, %s1302_s18  }
 0x25a   : > { %p15_p3 = scmp.ge.s32.totalorder %s18_s18, 4  }
 0x25c   :  { %17 = sbr.rel (!%p15_p3) target bundleno = 3 (0x3), region = 87 }
 0x263   :  { %804 = vsyncpa [#allocation3], 1 }
 0x264   :  { %806 = vsyncpa [#allocation3 + $0x1], 1 }
 0x265   :  { %807 = vsyncpa [#allocation5], 1 }
 0x266   :  { %808 = vsyncpa [#allocation8], 1 }

</bundles_post_ra>
